<compile_context>
chip_gen: v7x
topology: tpu7x:2x2x1
jax: 0.10.0
libtpu: 0.0.40
codegen_flags: <defaults>
</compile_context>

<pallas_src>
import functools

import jax
import jax.numpy as jnp
import numpy as np
from jax.experimental import pallas as pl
from jax.experimental.pallas import tpu as pltpu


def _round_up(x: int, m: int) -> int:
    return (x + m - 1) // m * m


def _ctc_greedy_kernel(blank, em_ref, halo_ref, out_ref):
    """Per-tile body.

    em_ref:   (TILE_T, L)  emission rows of this tile
    halo_ref: (H, L)       rows immediately preceding this tile (tile 0 gets a
                           clamped copy of its own head; unused there)
    out_ref:  (TILE_T, 1)  int32: argmax label index if kept, else -1
    """
    em = em_ref[...].astype(jnp.float32)                     # bf16 inputs ok
    big = jnp.int32(2**31 - 1)

    # --- first-occurrence argmax along the label (lane) axis, per timestep ---
    lane = jax.lax.broadcasted_iota(jnp.int32, em.shape, 1)  # hoisted, once/blk
    mx = jnp.max(em, axis=-1, keepdims=True)                 # (TILE_T, 1)
    idx = jnp.min(jnp.where(em == mx, lane, big),
                  axis=-1, keepdims=True)                    # (TILE_T, 1) i32

    # --- argmax of the last halo row == previous tile's last timestep -------
    h = halo_ref[halo_ref.shape[0] - 1:, :].astype(jnp.float32)   # (1, L)
    hlane = jax.lax.broadcasted_iota(jnp.int32, h.shape, 1)
    hmx = jnp.max(h, axis=-1, keepdims=True)
    prev_last = jnp.min(jnp.where(h == hmx, hlane, big),
                        axis=-1, keepdims=True)              # (1, 1) i32

    # --- unique_consecutive + blank removal ---------------------------------
    rolled = pltpu.roll(idx, shift=1, axis=0)                # row t <- idx[t-1]
    row = jax.lax.broadcasted_iota(jnp.int32, idx.shape, 0)
    first_row = row == 0
    prev = jnp.where(first_row, prev_last, rolled)           # fix the wrap
    changed = jnp.logical_or(
        idx != prev,
        jnp.logical_and(first_row, pl.program_id(0) == 0))   # global t==0
    keep = jnp.logical_and(changed, idx != jnp.int32(blank))

    # pack (idx, keep) into one int32 per timestep: keep ? idx : -1
    out_ref[...] = jnp.where(keep, idx, jnp.int32(-1))


def greedy_ctc_kernel(emission: jax.Array, blank: int = 0,
                      tile_t: int = 1024) -> jax.Array:
    """Returns packed int32[T]: argmax label index where kept, -1 where dropped."""
    T, L = emission.shape
    itemsize = jnp.dtype(emission.dtype).itemsize
    sub = 8 * max(1, 4 // itemsize)          # sublane granule: 8 (f32) / 16 (bf16)
    halo = sub                               # halo = one sublane granule of rows

    # Tile size: multiple of the granule, capped so 2x double-buffered input
    # tiles + outputs stay well under every generation's scoped-VMEM default.
    tile_t = max(sub, min(_round_up(tile_t, sub), _round_up(T, sub)))
    t_pad = _round_up(T, tile_t)

    if t_pad != T:
        # Pad with rows whose argmax is the blank label -> dropped downstream.
        pad = jnp.zeros((t_pad - T, L), emission.dtype).at[:, blank].set(1.0)
        emission = jnp.concatenate([emission, pad], axis=0)

    n_blk = t_pad // tile_t
    halo_stride = tile_t // halo             # halo-sized blocks per main tile

    packed = pl.pallas_call(
        functools.partial(_ctc_greedy_kernel, blank),
        out_shape=jax.ShapeDtypeStruct((t_pad, 1), jnp.int32),
        grid=(n_blk,),
        in_specs=[
            # main tile: TILE_T timesteps x all labels
            pl.BlockSpec((tile_t, L), lambda i: (i, 0)),
            # halo: the `halo` rows just before this tile (clamped for tile 0)
            pl.BlockSpec((halo, L),
                         lambda i: (jnp.maximum(i * halo_stride - 1, 0), 0)),
        ],
        out_specs=pl.BlockSpec((tile_t, 1), lambda i: (i, 0)),
        compiler_params=pltpu.CompilerParams(
            dimension_semantics=("parallel",)),   # halo makes blocks independent
    )(emission, emission)
    return packed[:T, 0]


def greedy_ctc_decode(emission: jax.Array, labels, blank: int = 0,
                      tile_t: int = 1024) -> str:
    packed = greedy_ctc_kernel(emission, blank, tile_t)
    packed = np.asarray(jax.block_until_ready(packed))
    # TODO(synk): label lookup / ''.join string assembly has no Pallas/TPU
    # equivalent; done host-side.
    return ''.join(labels[int(i)] for i in packed if int(i) >= 0)


def _reference_decode(emission_np, labels, blank=0) -> str:
    """Pure numpy/python reference matching the PyTorch module semantics."""
    indices = np.argmax(np.asarray(emission_np, dtype=np.float32), axis=-1)
    dedup = []
    for v in indices:
        if not dedup or int(v) != dedup[-1]:
            dedup.append(int(v))
    return ''.join(labels[i] for i in dedup if i != blank)


if __name__ == "__main__":
    labels = list("-" + "abcdefghijklmnopqrstuvwxyz" + " '.,?")
    assert len(labels) == 32
    blank = 0
    num_label = 32

    key = jax.random.PRNGKey(0)
    k1, k2, k3 = jax.random.split(key, 3)

    # 1) the module docstring shape: emission [num_seq=8, num_label=32]
    em_small = jax.random.normal(k1, (8, num_label), dtype=jnp.float32)
    got = greedy_ctc_decode(em_small, labels, blank=blank)
    ref = _reference_decode(np.asarray(em_small), labels, blank)
    assert got == ref, (got, ref)

    # 2) multi-tile case: exercises the grid, halo dedup-carry and padding
    #    (coarse integer logits -> plenty of ties / consecutive repeats).
    em_multi = jax.random.randint(k2, (600, num_label), 0, 4).astype(jnp.float32)
    got = greedy_ctc_decode(em_multi, labels, blank=blank, tile_t=128)
    ref = _reference_decode(np.asarray(em_multi), labels, blank)
    assert got == ref, (got, ref)

    # 3) bf16 emissions (halved HBM read traffic); exact integer values so the
    #    upcast-after-load argmax matches the f32 reference bit-for-bit.
    em_bf16 = jax.random.randint(k3, (600, num_label), 0, 4).astype(jnp.bfloat16)
    got = greedy_ctc_decode(em_bf16, labels, blank=blank, tile_t=128)
    ref = _reference_decode(np.asarray(em_bf16).astype(np.float32), labels, blank)
    assert got == ref, (got, ref)

    print("KERNEL_OK")
</pallas_src>

<mosaic_0001>
module attributes {stable_mosaic.version = 11 : i64} {
  func.func @_ctc_greedy_kernel(%arg0: i32, %arg1: memref<8x32xf32, #tpu.memory_space<vmem>>, %arg2: memref<8x32xf32, #tpu.memory_space<vmem>>, %arg3: memref<8x1xi32, #tpu.memory_space<vmem>>) attributes {dimension_semantics = [#tpu.dimension_semantics<parallel>], iteration_bounds = array<i64: 1>, scalar_prefetch = 0 : i64, scratch_operands = 0 : i64, tpu.core_type = #tpu.core_type<tc>, window_params = [{transform_indices = @transform_0, window_bounds = array<i64: 8, 32>}, {transform_indices = @transform_1, window_bounds = array<i64: 8, 32>}, {transform_indices = @transform_2, window_bounds = array<i64: 8, 1>}]} {
    %c0 = arith.constant 0 : index
    %c0_0 = arith.constant 0 : index
    %0 = vector.load %arg1[%c0, %c0_0] : memref<8x32xf32, #tpu.memory_space<vmem>>, vector<8x32xf32>
    %1 = tpu.iota {dimensions = array<i32: 1>} : vector<8x32xi32>
    %cst = arith.constant dense<0xFF800000> : vector<8xf32>
    %2 = vector.multi_reduction <maximumf>, %0, %cst [1] : vector<8x32xf32> to vector<8xf32>
    %3 = vector.shape_cast %2 : vector<8xf32> to vector<8x1xf32>
    %4 = vector.broadcast %3 : vector<8x1xf32> to vector<8x32xf32>
    %5 = arith.cmpf oeq, %0, %4 : vector<8x32xf32>
    %c2147483647_i32 = arith.constant 2147483647 : i32
    %6 = vector.broadcast %c2147483647_i32 : i32 to vector<8x32xi32>
    %7 = arith.select %5, %1, %6 : vector<8x32xi1>, vector<8x32xi32>
    %cst_1 = arith.constant dense<2147483647> : vector<8xi32>
    %8 = vector.multi_reduction <minsi>, %7, %cst_1 [1] : vector<8x32xi32> to vector<8xi32>
    %9 = vector.shape_cast %8 : vector<8xi32> to vector<8x1xi32>
    %c7 = arith.constant 7 : index
    %c0_2 = arith.constant 0 : index
    %10 = vector.load %arg2[%c7, %c0_2] : memref<8x32xf32, #tpu.memory_space<vmem>>, vector<1x32xf32>
    %11 = tpu.iota {dimensions = array<i32: 1>} : vector<1x32xi32>
    %cst_3 = arith.constant dense<0xFF800000> : vector<1xf32>
    %12 = vector.multi_reduction <maximumf>, %10, %cst_3 [1] : vector<1x32xf32> to vector<1xf32>
    %13 = vector.shape_cast %12 : vector<1xf32> to vector<1x1xf32>
    %14 = vector.broadcast %13 : vector<1x1xf32> to vector<1x32xf32>
    %15 = arith.cmpf oeq, %10, %14 : vector<1x32xf32>
    %c2147483647_i32_4 = arith.constant 2147483647 : i32
    %16 = vector.broadcast %c2147483647_i32_4 : i32 to vector<1x32xi32>
    %17 = arith.select %15, %11, %16 : vector<1x32xi1>, vector<1x32xi32>
    %cst_5 = arith.constant dense<2147483647> : vector<1xi32>
    %18 = vector.multi_reduction <minsi>, %17, %cst_5 [1] : vector<1x32xi32> to vector<1xi32>
    %19 = vector.shape_cast %18 : vector<1xi32> to vector<1x1xi32>
    %c1_i32 = arith.constant 1 : i32
    %20 = tpu.dynamic_rotate %9 by %c1_i32 dim 0 : vector<8x1xi32>, i32 -> vector<8x1xi32>
    %21 = tpu.iota {dimensions = array<i32: 0>} : vector<8x1xi32>
    %c0_i32 = arith.constant 0 : i32
    %22 = vector.broadcast %c0_i32 : i32 to vector<8x1xi32>
    %23 = arith.cmpi eq, %21, %22 : vector<8x1xi32>
    %24 = vector.shape_cast %19 : vector<1x1xi32> to vector<1x1xi32>
    %25 = vector.broadcast %24 : vector<1x1xi32> to vector<8x1xi32>
    %26 = arith.select %23, %25, %20 : vector<8x1xi1>, vector<8x1xi32>
    %27 = arith.cmpi ne, %9, %26 : vector<8x1xi32>
    %c0_i32_6 = arith.constant 0 : i32
    %28 = arith.cmpi eq, %arg0, %c0_i32_6 : i32
    %29 = vector.broadcast %28 : i1 to vector<8x1xi1>
    %30 = arith.andi %23, %29 : vector<8x1xi1>
    %31 = arith.ori %27, %30 : vector<8x1xi1>
    %c0_i32_7 = arith.constant 0 : i32
    %32 = vector.broadcast %c0_i32_7 : i32 to vector<8x1xi32>
    %33 = arith.cmpi ne, %9, %32 : vector<8x1xi32>
    %34 = arith.andi %31, %33 : vector<8x1xi1>
    %c-1_i32 = arith.constant -1 : i32
    %35 = vector.broadcast %c-1_i32 : i32 to vector<8x1xi32>
    %36 = arith.select %34, %9, %35 : vector<8x1xi1>, vector<8x1xi32>
    %c0_8 = arith.constant 0 : index
    %c0_9 = arith.constant 0 : index
    %37 = vector.load %arg3[%c0_8, %c0_9] : memref<8x1xi32, #tpu.memory_space<vmem>>, vector<8x1xi32>
    tpu.vector_store %arg3[%c0_8, %c0_9], %36 {strides = array<i32>} : memref<8x1xi32, #tpu.memory_space<vmem>>, vector<8x1xi32>,
    return
  }
  func.func @transform_0(%arg0: i32) -> (i32, i32) {
    %c0_i32 = arith.constant 0 : i32
    %c0_i32_0 = arith.constant 0 : i32
    return %arg0, %c0_i32 : i32, i32
  }
  func.func @transform_1(%arg0: i32) -> (i32, i32) {
    %c1_i32 = arith.constant 1 : i32
    %0 = arith.muli %arg0, %c1_i32 : i32
    %c1_i32_0 = arith.constant 1 : i32
    %1 = arith.subi %0, %c1_i32_0 : i32
    %c0_i32 = arith.constant 0 : i32
    %2 = arith.maxsi %1, %c0_i32 : i32
    %c0_i32_1 = arith.constant 0 : i32
    %c0_i32_2 = arith.constant 0 : i32
    return %2, %c0_i32_1 : i32, i32
  }
  func.func @transform_2(%arg0: i32) -> (i32, i32) {
    %c0_i32 = arith.constant 0 : i32
    %c0_i32_0 = arith.constant 0 : i32
    return %arg0, %c0_i32 : i32, i32
  }
}

</mosaic_0001>

<bundles_post_ra>
// kernel: tpu_custom_call.1
= control target key start
LH: loop header
LB: loop body
LE: loop exit
PB: predicated region body
PF: predicated region fallthrough
CT: control target
= control target key end

     0   :  { %7 = vsyncpa [#allocation3], 0  ;;  %s214_s0 = inlined_call_operand.hbm [shape: f32[8,32], index: 0, kind: input, shape index: {}]   ;;  %s215_s1 = inlined_call_operand.hbm [shape: f32[8,32], index: 1, kind: input, shape index: {}]   ;;  %s216_s2 = inlined_call_operand.vmem [shape: s32[8,1], index: 2, kind: output, shape index: {}]  }
   0x1   :  { %8 = vsyncpa [#allocation5], 0  ;;  %s168_s9 = smov [#allocation2]   ;;  %s169_s11 = smov [#allocation4]  }
   0x2   :  { %s15_s10 = sshll.u32 %s168_s9, 4  ;;  %s30_s12 = sshll.u32 %s169_s11, 4  ;;  %s16_s10 = int_to_ptr.vmem [resolvable:$true] %s15_s10  ;;  %s31_s12 = int_to_ptr.vmem [resolvable:$true] %s30_s12 }
   0x3   :  { %s120_s15 = scalar_lea.hbm %s214_s0, 128 }
   0x4   :  { %p121_p0 = scmp.ne.s32.totalorder %s214_s0, %s120_s15  ;;  %p124_p1 = scmp.lt.u32.totalorder %s120_s15, %s214_s0 }
   0x6   :  { %p126_p2 = pnand %p124_p1, %p121_p0 }
   0x8   :  { %129 = shalt.err (!%p126_p2)
}
   0x9   :  { %s130_s20 = scalar_lea.vmem %s16_s10, 128  ;;  %p135_p4 = scmp.lt.s32.totalorder %s16_s10, %s16_s10 }
   0xa   :  { %p131_p3 = scmp.ne.s32.totalorder %s16_s10, %s130_s20  ;;  %p136_p5 = scmp.lt.s32.totalorder %s130_s20, %s130_s20 }
   0xc   :  { %p137_p6 = por %p136_p5, %p135_p4 }
   0xe   :  { %p138_p7 = pnand %p137_p6, %p131_p3 }
  0x10   :  { %141 = shalt.err (!%p138_p7)
}
  0x11   :  { %18 = dma.hbm_to_vmem [thread:$0]  %s214_s0, 128, %s16_s10, [#allocation3]  }
  0x12   :  { %s142_s25 = scalar_lea.hbm %s215_s1, 128 }
  0x13   :  { %p143_p8 = scmp.ne.s32.totalorder %s215_s1, %s142_s25  ;;  %p146_p9 = scmp.lt.u32.totalorder %s142_s25, %s215_s1 }
  0x15   :  { %p148_p10 = pnand %p146_p9, %p143_p8 }
  0x17   :  { %151 = shalt.err (!%p148_p10)
}
  0x18   :  { %s152_s30 = scalar_lea.vmem %s31_s12, 128  ;;  %p157_p12 = scmp.lt.s32.totalorder %s31_s12, %s31_s12 }
  0x19   :  { %p153_p11 = scmp.ne.s32.totalorder %s31_s12, %s152_s30  ;;  %p158_p13 = scmp.lt.s32.totalorder %s152_s30, %s152_s30 }
  0x1b   :  { %p159_p0 = por %p158_p13, %p157_p12 }
  0x1d   :  { %p160_p1 = pnand %p159_p0, %p153_p11 }
  0x1f   :  { %163 = shalt.err (!%p160_p1)
}
  0x20   :  { %33 = dma.hbm_to_vmem [thread:$0]  %s215_s1, 128, %s31_s12, [#allocation5]  }
  0x21   :  { %164 = dma.done.wait [#allocation3], 128  }
  0x22   :  { %165 = vsyncadd [#allocation3], 4294967168 }
  0x23   :  { %166 = dma.done.wait [#allocation5], 128  }
  0x24   :  { %167 = vsyncadd [#allocation5], 4294967168  ;;  %vm46_vm0 = vcmask 261120   ;;  %v43_v0 = vld [vmem:[#allocation2] sm:$0xff]  ;;  %v67_v1 = vld [vmem:[#allocation4 + $0x7] sm:$0x1]  ;;  %v44_v4 = vlaneseq }
  0x25   :  { %vm68_vm1 = vcmask 253952   ;;  %v47_v2 = vsel %vm46_vm0, %v43_v0, -inf  ;;  %vm108_vm9 = vcmask 7168  }
  0x26   :  { %48 = vmax.xlane.f32.xlu0 %v47_v2  ;;  %v69_v3 = vsel %vm68_vm1, %v67_v1, -inf  ;;  %v45_v5 = vand.u32 127, %v44_v4  ;;  %v91_v26 = vshrl.u32 %v44_v4, 7 }
  0x28   :  { %v95_v33 = vsub.s32 0, %v91_v26  ;;  %vm92_vm6 = vcmp.eq.s32.totalorder %v91_v26, 0 }
  0x2a   :  { %70 = vmax.xlane.f32.xlu0 %v69_v3 }
  0xb3   :  { %v49_v6 = vpop.xlane.xlu0 %48 }
  0xb4   :  { %vm50_vm2 = vcmp.eq.f32.partialorder %v43_v0, %v49_v6 }
  0xb5   :  { %v51_v7 = vsel %vm50_vm2, %v45_v5, 2147483647 }
  0xb6   :  { %v52_v8 = vsel %vm46_vm0, %v51_v7, 2147483647 }
  0xb7   :  { %v71_v9 = vpop.xlane.xlu0 %70  ;;  %v54_v10 = vshra.s32 %v52_v8, 16  ;;  %v53_v16 = vand.u32 65535, %v52_v8 }
  0xb8   :  { %vm72_vm3 = vcmp.eq.f32.partialorder %v67_v1, %v71_v9 }
  0xb9   :  { %v73_v11 = vsel %vm72_vm3, %v45_v5, 2147483647  ;;  %v56_v12 = vcvt.s32.f32 %v54_v10  ;;  %v55_v18 = vcvt.s32.f32 %v53_v16 }
  0xba   :  { %v74_v13 = vsel %vm68_vm1, %v73_v11, 2147483647 }
  0xbb   :  { %57 = vmin.xlane.f32.xlu1 %v56_v12  ;;  %v76_v14 = vshra.s32 %v74_v13, 16  ;;  %v75_v19 = vand.u32 65535, %v74_v13 }
  0xbd   :  { %v78_v15 = vcvt.s32.f32 %v76_v14  ;;  %v77_v22 = vcvt.s32.f32 %v75_v19 }
  0xbf   :  { %79 = vmin.xlane.f32.xlu1 %v78_v15 }
 0x148   :  { %v58_v17 = vpop.xlane.xlu1 %57 }
 0x149   :  { %vm59_vm4 = vcmp.eq.f32.partialorder %v56_v12, %v58_v17  ;;  %v64_v24 = vcvt.f32.s32 %v58_v17 }
 0x14a   :  { %v60_v20 = vsel %vm59_vm4, %v55_v18, inf }
 0x14b   :  { %61 = vmin.xlane.f32.xlu0 %v60_v20  ;;  %v65_v29 = vshll.u32 %v64_v24, 16 }
 0x14c   :  { %v80_v21 = vpop.xlane.xlu1 %79 }
 0x14d   :  { %vm81_vm5 = vcmp.eq.f32.partialorder %v78_v15, %v80_v21  ;;  %v86_v27 = vcvt.f32.s32 %v80_v21 }
 0x14e   :  { %v82_v23 = vsel %vm81_vm5, %v77_v22, inf }
 0x14f   :  { %83 = vmin.xlane.f32.xlu1 %v82_v23  ;;  %v87_v31 = vshll.u32 %v86_v27, 16 }
 0x1d8   :  { %v62_v25 = vpop.xlane.xlu0 %61 }
 0x1d9   :  { %v63_v28 = vcvt.f32.s32 %v62_v25 }
 0x1db   :  { %v66_v32 = vadd.s32 %v65_v29, %v63_v28 }
 0x1dc   :  { %v84_v30 = vpop.xlane.xlu1 %83 }
 0x1dd   :  { %v85_v34 = vcvt.f32.s32 %v84_v30  ;;  %v89_v36 = vrot.slane %v66_v32, 7  ;;  %vm105_vm8 = vcmp.ne.s32.totalorder %v66_v32, 0 }
 0x1df   :  { %v88_v35 = vadd.s32 %v87_v31, %v85_v34 }
 0x1e1   :  { %v96_v37 = vrot.slane %v88_v35, %v95_v33 }
 0x1e3   :  { %v97_v38 = vsel %vm92_vm6, %v96_v37, %v89_v36 }
 0x1e4   :  { %vm98_vm7 = vcmp.ne.s32.totalorder %v66_v32, %v97_v38 }
 0x1e5   :  { %vm104_vm10 = vmor %vm98_vm7, %vm92_vm6 }
 0x1e6   :  { %vm106_vm11 = vmand %vm104_vm10, %vm105_vm8 }
 0x1e7   :  { %v107_v39 = vsel %vm106_vm11, %v66_v32, 4294967295 }
 0x1e8   :  { %109 = vst.msk [vmem:[%s216_s2] sm:$0xff] %vm108_vm9, %v107_v39 }
 0x1e9   :  { %114 = vsyncpa [#allocation3], 1 }
 0x1ea   :  { %115 = vsyncpa [#allocation5], 1 }

</bundles_post_ra>
